<compile_context>
chip_gen: v6e
topology: v6e:2x2x1
jax: 0.10.0
libtpu: 0.0.40
codegen_flags: <defaults>
</compile_context>

<pallas_src>
import jax
import jax.numpy as jnp
from jax.experimental import pallas as pl
from jax.experimental.pallas import tpu as pltpu

# ---- model configuration (small, consistent with the module) ----------------
B = 2           # batch
C_IN = 2        # input channels (real/imag of bispectrum)
H = 16          # height (== input_len)
W = 16          # width  (sequence length of the output)
N_HEADS = 2     # n_heads
LINEAR_CH = 32  # linear_ch (channels entering the final nn.Linear(linear_ch, 1))
F = C_IN * H    # flattened feature dim per spatial column
HC = N_HEADS * LINEAR_CH
BW = B * W


def _elu(x):
    # ELU activation (self.act_fn)
    return jnp.where(x > 0, x, jnp.exp(x) - 1.0)


def cnnbs_kernel(x_ref, whf_ref, bhf_ref, wlt_ref, bl_ref, o_ref):
    """Single invocation handles the whole (tiny) problem.

    x_ref  : (F, B*W)    VMEM  input features, batch folded into the lane axis
    whf_ref: (HC, F)     VMEM  fused per-head projection weights
    bhf_ref: (HC, 1)     VMEM  fused per-head biases (column for lane broadcast)
    wlt_ref: (HC, 1)     VMEM  final linear weight column, tiled over heads
    bl_ref : (1, 1)      SMEM  final linear bias (true scalar)
    o_ref  : (1, B*W)    VMEM  output rs1, lane-dense
    """
    # One fused MXU matmul for all heads and all batch elements.
    s = jnp.dot(whf_ref[...], x_ref[...],
                preferred_element_type=jnp.float32)          # (HC, B*W)
    s = s + bhf_ref[...]                                     # per-(head,channel) bias
    a = _elu(s)                                              # head nonlinearity

    # Head-sum + final Linear(linear_ch -> 1) fused into one sublane reduce:
    #   sum_{h,c} wl[c] * a[h*LINEAR_CH + c, :]  ==  wl . (sum_h elu(s_h))
    rs = jnp.sum(a * wlt_ref[...], axis=0, keepdims=True)    # (1, B*W)  VPU/XLU
    rs = rs + bl_ref[0, 0]
    o_ref[...] = _elu(rs).astype(o_ref.dtype)


def cnnbs_forward(x_nchw, w_heads, b_heads, w_lin, b_lin):
    """x_nchw: (B, C_IN, H, W) float32 -> (B, 1, W) float32."""
    assert x_nchw.shape == (B, C_IN, H, W)
    # (B, C, H, W) -> (B, F, W) -> (F, B, W) -> (F, B*W): batch folded onto lanes.
    x_feat = jnp.transpose(x_nchw.reshape(B, F, W), (1, 0, 2)).reshape(F, BW)

    whf = w_heads.reshape(HC, F)                              # fused head weights
    bhf = b_heads.reshape(HC, 1)                              # fused head biases (column)
    wl_tiled = jnp.tile(w_lin.reshape(LINEAR_CH, 1), (N_HEADS, 1))  # (HC, 1)
    bl = b_lin.reshape(1, 1)                                  # scalar bias -> SMEM

    out = pl.pallas_call(
        cnnbs_kernel,
        out_shape=jax.ShapeDtypeStruct((1, BW), jnp.float32),
        in_specs=[
            pl.BlockSpec(memory_space=pltpu.MemorySpace.VMEM),  # x_feat
            pl.BlockSpec(memory_space=pltpu.MemorySpace.VMEM),  # whf
            pl.BlockSpec(memory_space=pltpu.MemorySpace.VMEM),  # bhf
            pl.BlockSpec(memory_space=pltpu.MemorySpace.VMEM),  # wl_tiled
            pl.BlockSpec(memory_space=pltpu.MemorySpace.SMEM),  # bl (scalar)
        ],
        out_specs=pl.BlockSpec(memory_space=pltpu.MemorySpace.VMEM),
    )(x_feat, whf, bhf, wl_tiled, bl)

    # (1, B*W) lane-dense kernel output -> (B, 1, W) to match the module.
    return out.reshape(B, W)[:, None, :]


def cnnbs_reference(x_nchw, w_heads, b_heads, w_lin, b_lin):
    """Pure-JAX reference mirroring the original forward semantics."""
    x_feat = x_nchw.reshape(B, F, W)                          # (B, F, W)
    post = jnp.zeros((B, LINEAR_CH, W), jnp.float32)
    for h in range(N_HEADS):
        s = jnp.einsum('cf,bfw->bcw', w_heads[h], x_feat) + b_heads[h][None, :, None]
        post = post + _elu(s)
    rs = jnp.einsum('oc,bcw->bow', w_lin, post) + b_lin.reshape(1, 1, 1)
    return _elu(rs)                                           # (B, 1, W)


def init_params(key):
    k1, k2, k3, k4 = jax.random.split(key, 4)
    w_heads = 0.05 * jax.random.normal(k1, (N_HEADS, LINEAR_CH, F), jnp.float32)
    b_heads = 0.01 * jax.random.normal(k2, (N_HEADS, LINEAR_CH), jnp.float32)
    w_lin = 0.1 * jax.random.normal(k3, (1, LINEAR_CH), jnp.float32)
    b_lin = 0.01 * jax.random.normal(k4, (1, 1), jnp.float32)
    return w_heads, b_heads, w_lin, b_lin


if __name__ == "__main__":
    key = jax.random.PRNGKey(0)
    kx, kp = jax.random.split(key)
    x = jax.random.normal(kx, (B, C_IN, H, W), jnp.float32)
    w_heads, b_heads, w_lin, b_lin = init_params(kp)

    fwd = jax.jit(cnnbs_forward)
    out = fwd(x, w_heads, b_heads, w_lin, b_lin)
    out = jax.block_until_ready(out)
    assert out.shape == (B, 1, W)
    assert jnp.all(jnp.isfinite(out))

    ref = cnnbs_reference(x, w_heads, b_heads, w_lin, b_lin)
    assert jnp.allclose(out, ref, rtol=1e-4, atol=1e-4)
    print("KERNEL_OK")
</pallas_src>

<mosaic_0001>
module attributes {stable_mosaic.version = 11 : i64} {
  func.func @cnnbs_kernel(%arg0: memref<32x32xf32, #tpu.memory_space<vmem>>, %arg1: memref<64x32xf32, #tpu.memory_space<vmem>>, %arg2: memref<64x1xf32, #tpu.memory_space<vmem>>, %arg3: memref<64x1xf32, #tpu.memory_space<vmem>>, %arg4: memref<1x1xf32, #tpu.memory_space<smem>>, %arg5: memref<1x32xf32, #tpu.memory_space<vmem>>) attributes {dimension_semantics = [], scalar_prefetch = 0 : i64, scratch_operands = 0 : i64, tpu.core_type = #tpu.core_type<tc>} {
    %c0 = arith.constant 0 : index
    %c0_0 = arith.constant 0 : index
    %0 = vector.load %arg1[%c0, %c0_0] : memref<64x32xf32, #tpu.memory_space<vmem>>, vector<64x32xf32>
    %c0_1 = arith.constant 0 : index
    %c0_2 = arith.constant 0 : index
    %1 = vector.load %arg0[%c0_1, %c0_2] : memref<32x32xf32, #tpu.memory_space<vmem>>, vector<32x32xf32>
    %cst = arith.constant dense<0.000000e+00> : vector<64x32xf32>
    %2 = tpu.matmul %0, %1, %cst {dimension_numbers = #tpu.dot_dimension_numbers<[1], [0], [0], [1], [0, 0, 1, 1], [], []>} : vector<64x32xf32>, vector<32x32xf32>, vector<64x32xf32> -> vector<64x32xf32>
    %c0_3 = arith.constant 0 : index
    %c0_4 = arith.constant 0 : index
    %3 = vector.load %arg2[%c0_3, %c0_4] : memref<64x1xf32, #tpu.memory_space<vmem>>, vector<64x1xf32>
    %4 = vector.broadcast %3 : vector<64x1xf32> to vector<64x32xf32>
    %5 = arith.addf %2, %4 : vector<64x32xf32>
    %cst_5 = arith.constant 0.000000e+00 : f32
    %6 = vector.broadcast %cst_5 : f32 to vector<64x32xf32>
    %7 = arith.cmpf ogt, %5, %6 : vector<64x32xf32>
    %8 = math.exp %5 : vector<64x32xf32>
    %cst_6 = arith.constant 1.000000e+00 : f32
    %9 = vector.broadcast %cst_6 : f32 to vector<64x32xf32>
    %10 = arith.subf %8, %9 : vector<64x32xf32>
    %11 = arith.select %7, %5, %10 : vector<64x32xi1>, vector<64x32xf32>
    %c0_7 = arith.constant 0 : index
    %c0_8 = arith.constant 0 : index
    %12 = vector.load %arg3[%c0_7, %c0_8] : memref<64x1xf32, #tpu.memory_space<vmem>>, vector<64x1xf32>
    %13 = vector.broadcast %12 : vector<64x1xf32> to vector<64x32xf32>
    %14 = arith.mulf %11, %13 : vector<64x32xf32>
    %cst_9 = arith.constant dense<0.000000e+00> : vector<32xf32>
    %15 = vector.multi_reduction <add>, %14, %cst_9 [0] : vector<64x32xf32> to vector<32xf32>
    %16 = vector.shape_cast %15 : vector<32xf32> to vector<1x32xf32>
    %c0_10 = arith.constant 0 : index
    %c0_11 = arith.constant 0 : index
    %17 = memref.load %arg4[%c0_10, %c0_11] : memref<1x1xf32, #tpu.memory_space<smem>>
    %18 = vector.broadcast %17 : f32 to vector<1x32xf32>
    %19 = arith.addf %16, %18 : vector<1x32xf32>
    %cst_12 = arith.constant 0.000000e+00 : f32
    %20 = vector.broadcast %cst_12 : f32 to vector<1x32xf32>
    %21 = arith.cmpf ogt, %19, %20 : vector<1x32xf32>
    %22 = math.exp %19 : vector<1x32xf32>
    %cst_13 = arith.constant 1.000000e+00 : f32
    %23 = vector.broadcast %cst_13 : f32 to vector<1x32xf32>
    %24 = arith.subf %22, %23 : vector<1x32xf32>
    %25 = arith.select %21, %19, %24 : vector<1x32xi1>, vector<1x32xf32>
    %c0_14 = arith.constant 0 : index
    %c0_15 = arith.constant 0 : index
    %26 = vector.load %arg5[%c0_14, %c0_15] : memref<1x32xf32, #tpu.memory_space<vmem>>, vector<1x32xf32>
    tpu.vector_store %arg5[%c0_14, %c0_15], %25 {strides = array<i32>} : memref<1x32xf32, #tpu.memory_space<vmem>>, vector<1x32xf32>,
    return
  }
}

</mosaic_0001>

<bundles_post_ra>
// kernel: cnnbs_forward.1
= control target key start
LH: loop header
LB: loop body
LE: loop exit
PB: predicated region body
PF: predicated region fallthrough
CT: control target
= control target key end

     0   :  { %v420_v2 = vmov 0   ;;  %vm81_vm0 = vcmask 261120   ;;  %vm336_vm9 = vcmask 253952   ;;  %s567_s0 = inlined_call_operand.vmem [shape: f32[32,32], index: 0, kind: input, shape index: {}]   ;;  %s568_s1 = inlined_call_operand.vmem [shape: f32[64,32], index: 1, kind: input, shape index: {}]   ;;  %s569_s2 = inlined_call_operand.vmem [shape: f32[64,1], index: 2, kind: input, shape index: {}]   ;;  %s570_s3 = inlined_call_operand.vmem [shape: f32[64,1], index: 3, kind: input, shape index: {}]   ;;  %s571_s4 = inlined_call_operand.<no memory space> [shape: f32[1,1], index: 4, kind: input, shape index: {}]   ;;  %s572_s5 = inlined_call_operand.vmem [shape: f32[1,32], index: 5, kind: output, shape index: {}]  }
   0x1   :  { %v32_v0 = vld [vmem:[%s567_s0 + $0x18] sm:$0xff]  ;;  %v31_v1 = vld [vmem:[%s567_s0 + $0x10] sm:$0xff]  ;;  %400 = vset.pattern.permute.xlu0 %v420_v2  ;;  %401 = vset.pattern.permute.xlu1 %v420_v2  ;;  %v30_v3 = vld [vmem:[%s567_s0 + $0x8] sm:$0xff] }
   0x2   :  { %371 = vmatprep.subr.mxu0 %v32_v0  ;;  %391 = vmatprep.subr.mxu1 %v32_v0  ;;  %v29_v4 = vld [vmem:[%s567_s0] sm:$0xff]  ;;  %v22_v7 = vld [vmem:[%s568_s1 + $0x8] sm:$0xff]  ;;  %v23_v9 = vld [vmem:[%s568_s1 + $0x10] sm:$0xff] }
   0x3   :  { %372 = vmatpush3.msra.mxu0 %v32_v0  ;;  %395 = vmatpush3.msra.mxu1 %v32_v0  ;;  %v21_v5 = vld [vmem:[%s568_s1] sm:$0xff]  ;;  %v26_v8 = vld [vmem:[%s568_s1 + $0x28] sm:$0xff]  ;;  %v27_v10 = vld [vmem:[%s568_s1 + $0x30] sm:$0xff] }
   0x4   :  { %373 = vmatprep.subr.mxu0 %v31_v1  ;;  %392 = vmatprep.subr.mxu1 %v31_v1  ;;  %v25_v6 = vld [vmem:[%s568_s1 + $0x20] sm:$0xff]  ;;  %v35_v12 = vld [vmem:[%s569_s2 + $0x10] sm:$0xff]  ;;  %v24_v13 = vld [vmem:[%s568_s1 + $0x18] sm:$0xff] }
   0x5   :  { %374 = vmatpush3.msra.mxu0 %v31_v1  ;;  %396 = vmatpush3.msra.mxu1 %v31_v1  ;;  %v33_v11 = vld [vmem:[%s569_s2] sm:$0xff]  ;;  %v28_v14 = vld [vmem:[%s568_s1 + $0x38] sm:$0xff]  ;;  %v34_v15 = vld [vmem:[%s569_s2 + $0x8] sm:$0xff] }
   0x6   :  { %375 = vmatprep.subr.mxu0 %v30_v3  ;;  %393 = vmatprep.subr.mxu1 %v30_v3  ;;  %v36_v16 = vld [vmem:[%s569_s2 + $0x18] sm:$0xff]  ;;  %v37_v17 = vld [vmem:[%s569_s2 + $0x20] sm:$0xff]  ;;  %v38_v18 = vld [vmem:[%s569_s2 + $0x28] sm:$0xff] }
   0x7   :  { %376 = vmatpush3.msra.mxu0 %v30_v3  ;;  %397 = vmatpush3.msra.mxu1 %v30_v3  ;;  %v39_v19 = vld [vmem:[%s569_s2 + $0x30] sm:$0xff]  ;;  %v40_v20 = vld [vmem:[%s569_s2 + $0x38] sm:$0xff]  ;;  %v251_v21 = vld [vmem:[%s570_s3] sm:$0xff] }
   0x8   :  { %377 = vmatprep.subr.mxu0 %v29_v4  ;;  %394 = vmatprep.subr.mxu1 %v29_v4  ;;  %v252_v22 = vld [vmem:[%s570_s3 + $0x8] sm:$0xff]  ;;  %v253_v23 = vld [vmem:[%s570_s3 + $0x10] sm:$0xff]  ;;  %v254_v24 = vld [vmem:[%s570_s3 + $0x18] sm:$0xff] }
   0x9   :  { %378 = vmatpush3.msra.mxu0 %v29_v4  ;;  %398 = vmatpush3.msra.mxu1 %v29_v4  ;;  %v255_v25 = vld [vmem:[%s570_s3 + $0x20] sm:$0xff]  ;;  %v256_v26 = vld [vmem:[%s570_s3 + $0x28] sm:$0xff]  ;;  %v257_v27 = vld [vmem:[%s570_s3 + $0x30] sm:$0xff] }
   0xa   :  { %379 = vmatprep.mubr.msk.f32.mxu0 %vm81_vm0, %v21_v5  ;;  %385 = vmatprep.mubr.msk.f32.mxu1 %vm81_vm0, %v25_v6  ;;  %v258_v28 = vld [vmem:[%s570_s3 + $0x38] sm:$0xff] }
   0xb   :  { %380 = vmatmul.mubr.msk.f32.vlgmr.msra.gmra.mxu0 %vm81_vm0, %v22_v7  ;;  %386 = vmatmul.mubr.msk.f32.vlgmr.msra.gmra.mxu1 %vm81_vm0, %v26_v8 }
   0xc   :  { %382 = vmatprep.mubr.msk.f32.mxu0 %vm81_vm0, %v23_v9  ;;  %388 = vmatprep.mubr.msk.f32.mxu1 %vm81_vm0, %v27_v10 }
   0xd   :  { %43 = vperm.xlu0 %400, %v33_v11   ;;  %53 = vperm.xlu1 %401, %v35_v12  }
   0xf   :  { %383 = vmatmul.mubr.msk.f32.gmra.mxu0 %vm81_vm0, %v24_v13  ;;  %389 = vmatmul.mubr.msk.f32.gmra.mxu1 %vm81_vm0, %v28_v14 }
  0x11   :  { %48 = vperm.xlu0 %400, %v34_v15   ;;  %58 = vperm.xlu1 %401, %v36_v16  }
  0x15   :  { %63 = vperm.xlu0 %400, %v37_v17   ;;  %68 = vperm.xlu1 %401, %v38_v18  }
  0x19   :  { %73 = vperm.xlu0 %400, %v39_v19   ;;  %78 = vperm.xlu1 %401, %v40_v20  }
  0x1d   :  { %261 = vperm.xlu0 %400, %v251_v21   ;;  %266 = vperm.xlu1 %401, %v252_v22  }
  0x21   :  { %271 = vperm.xlu0 %400, %v253_v23   ;;  %276 = vperm.xlu1 %401, %v254_v24  }
  0x25   :  { %281 = vperm.xlu0 %400, %v255_v25   ;;  %286 = vperm.xlu1 %401, %v256_v26  }
  0x29   :  { %291 = vperm.xlu0 %400, %v257_v27   ;;  %296 = vperm.xlu1 %401, %v258_v28  }
  0x88   :  { %v54_v29 = vpop.permute.xlu1 %53  ;;  %v44_v30 = vpop.permute.xlu0 %43 }
  0x8c   :  { %v59_v31 = vpop.permute.xlu1 %58  ;;  %v49_v32 = vpop.permute.xlu0 %48 }
  0x90   :  { %v69_v33 = vpop.permute.xlu1 %68  ;;  %v64_v36 = vpop.permute.xlu0 %63 }
  0x94   :  { %v79_v47 = vpop.permute.xlu1 %78  ;;  %v74_v53 = vpop.permute.xlu0 %73 }
  0x98   :  { %v262_v61 = vpop.permute.xlu0 %261  ;;  %v267_v63 = vpop.permute.xlu1 %266 }
  0x9c   :  { %v272_v4 = vpop.permute.xlu0 %271  ;;  %v277_v8 = vpop.permute.xlu1 %276 }
  0xa0   :  { %v282_v21 = vpop.permute.xlu0 %281  ;;  %v287_v28 = vpop.permute.xlu1 %286 }
  0xcb   :  { %v381_v34 = vpop.f32.mrf.mxu0  ;;  %v387_v35 = vpop.f32.mrf.mxu1 }
  0xcc   :  { %v178_v37 = vadd.f32 %v381_v34, %v49_v32  ;;  %v543_v38 = vadd.f32 %v387_v35, %v69_v33 }
  0xcd   :  { %v172_v39 = vpop.f32.mrf.mxu0  ;;  %v192_v40 = vpop.f32.mrf.mxu1 }
  0xce   :  { %v221_v41 = vmul.f32 1.442695, %v178_v37  ;;  %v229_v42 = vmul.f32 1.442695, %v543_v38  ;;  %v173_v43 = vadd.f32 %v172_v39, %v44_v30  ;;  %v193_v44 = vadd.f32 %v192_v40, %v64_v36  ;;  %v292_v39 = vpop.permute.xlu0 %291 }
  0xcf   :  { %v384_v45 = vpop.f32.mrf.mxu0  ;;  %v390_v46 = vpop.f32.mrf.mxu1  ;;  %vm212_vm1 = vcmp.gt.f32.partialorder %v178_v37, 0.0  ;;  %vm216_vm6 = vcmp.gt.f32.partialorder %v543_v38, 0.0 }
  0xd0   :  { %402 = vpow2.f32 %v221_v41  ;;  %v188_v48 = vadd.f32 %v384_v45, %v59_v31  ;;  %v219_v49 = vmul.f32 1.442695, %v173_v43  ;;  %v546_v50 = vadd.f32 %v390_v46, %v79_v47 }
  0xd1   :  { %v182_v51 = vpop.f32.mrf.mxu0  ;;  %v202_v52 = vpop.f32.mrf.mxu1  ;;  %404 = vpow2.f32 %v229_v42  ;;  %v227_v54 = vmul.f32 1.442695, %v193_v44  ;;  %vm211_vm2 = vcmp.gt.f32.partialorder %v173_v43, 0.0  ;;  %vm215_vm4 = vcmp.gt.f32.partialorder %v193_v44, 0.0 }
  0xd2   :  { %v225_v55 = vmul.f32 1.442695, %v188_v48  ;;  %406 = vpow2.f32 %v219_v49  ;;  %v183_v56 = vadd.f32 %v182_v51, %v54_v29  ;;  %v203_v57 = vadd.f32 %v202_v52, %v74_v53 }
  0xd3   :  { %408 = vpow2.f32 %v227_v54  ;;  %v233_v58 = vmul.f32 1.442695, %v546_v50  ;;  %vm214_vm3 = vcmp.gt.f32.partialorder %v188_v48, 0.0  ;;  %vm218_vm8 = vcmp.gt.f32.partialorder %v546_v50, 0.0 }
  0xd4   :  { %410 = vpow2.f32 %v225_v55  ;;  %v223_v59 = vmul.f32 1.442695, %v183_v56  ;;  %v231_v60 = vmul.f32 1.442695, %v203_v57  ;;  %vm213_vm5 = vcmp.gt.f32.partialorder %v183_v56, 0.0 }
  0xd5   :  { %vm217_vm7 = vcmp.gt.f32.partialorder %v203_v57, 0.0 }
  0xd6   :  { %412 = vpow2.f32 %v223_v59 }
  0xd7   :  { %414 = vpow2.f32 %v231_v60 }
  0xd8   :  { %416 = vpow2.f32 %v233_v58 }
  0xdd   :  { %v403_v62 = vpop.eup %402 }
  0xde   :  { %v351_v0 = vadd.f32 -1.0, %v403_v62  ;;  %v405_v1 = vpop.eup %404 }
  0xdf   :  { %v407_v2 = vpop.eup %406  ;;  %v355_v16 = vadd.f32 -1.0, %v405_v1 }
  0xe0   :  { %v409_v3 = vpop.eup %408  ;;  %v244_v5 = vsel %vm212_vm1, %v178_v37, %v351_v0  ;;  %v350_v6 = vadd.f32 -1.0, %v407_v2 }
  0xe1   :  { %v411_v7 = vpop.eup %410  ;;  %v354_v10 = vadd.f32 -1.0, %v409_v3  ;;  %v300_v13 = vmul.f32 %v267_v63, %v244_v5  ;;  %v248_v29 = vsel %vm216_vm6, %v543_v38, %v355_v16 }
  0xe2   :  { %v243_v9 = vsel %vm211_vm2, %v173_v43, %v350_v6  ;;  %v353_v11 = vadd.f32 -1.0, %v411_v7  ;;  %v304_v36 = vmul.f32 %v287_v28, %v248_v29  ;;  %v297_v43 = vpop.permute.xlu1 %296 }
  0xe3   :  { %v413_v12 = vpop.eup %412  ;;  %v299_v14 = vmul.f32 %v262_v61, %v243_v9  ;;  %v247_v22 = vsel %vm215_vm4, %v193_v44, %v354_v10  ;;  %v308_v25 = vsel %vm81_vm0, %v300_v13, 0.0 }
  0xe4   :  { %v415_v15 = vpop.eup %414  ;;  %v246_v17 = vsel %vm214_vm3, %v188_v48, %v353_v11  ;;  %v352_v18 = vadd.f32 -1.0, %v413_v12  ;;  %v303_v32 = vmul.f32 %v282_v21, %v247_v22  ;;  %v316_v45 = vsel %vm81_vm0, %v304_v36, 0.0 }
  0xe5   :  { %v417_v19 = vpop.eup %416  ;;  %v307_v20 = vsel %vm81_vm0, %v299_v14, 0.0  ;;  %v356_v24 = vadd.f32 -1.0, %v415_v15  ;;  %v302_v26 = vmul.f32 %v277_v8, %v246_v17 }
  0xe6   :  { %v245_v23 = vsel %vm213_vm5, %v183_v56, %v352_v18  ;;  %v309_v30 = vadd.f32 %v308_v25, %v307_v20  ;;  %v357_v31 = vadd.f32 -1.0, %v417_v19  ;;  %v314_v42 = vsel %vm81_vm0, %v303_v32, 0.0 }
  0xe7   :  { %v301_v27 = vmul.f32 %v272_v4, %v245_v23  ;;  %v249_v35 = vsel %vm217_vm7, %v203_v57, %v356_v24  ;;  %v312_v37 = vsel %vm81_vm0, %v302_v26, 0.0  ;;  %v329_v57 = vstv %s571_s4 }
  0xe8   :  { %v250_v40 = vsel %vm218_vm8, %v546_v50, %v357_v31  ;;  %v305_v38 = vmul.f32 %v292_v39, %v249_v35 }
  0xe9   :  { %v310_v33 = vsel %vm81_vm0, %v301_v27, 0.0  ;;  %v306_v46 = vmul.f32 %v297_v43, %v250_v40 }
  0xea   :  { %v311_v34 = vadd.f32 %v310_v33, %v309_v30  ;;  %v318_v48 = vsel %vm81_vm0, %v305_v38, 0.0 }
  0xeb   :  { %v320_v51 = vsel %vm81_vm0, %v306_v46, 0.0 }
  0xec   :  { %v313_v41 = vadd.f32 %v312_v37, %v311_v34 }
  0xee   :  { %v315_v44 = vadd.f32 %v314_v42, %v313_v41 }
  0xf0   :  { %v317_v47 = vadd.f32 %v316_v45, %v315_v44 }
  0xf2   :  { %v319_v49 = vadd.f32 %v318_v48, %v317_v47 }
  0xf4   :  { %v321_v52 = vadd.f32 %v320_v51, %v319_v49 }
  0xf6   :  { %v322_v53 = vrot.slane %v321_v52, 4 }
  0xf8   :  { %v323_v54 = vadd.f32 %v322_v53, %v321_v52 }
  0xfa   :  { %v324_v55 = vrot.slane %v323_v54, 2 }
  0xfc   :  { %v325_v50 = vadd.f32 %v324_v55, %v323_v54 }
  0xfe   :  { %v326_v56 = vrot.slane %v325_v50, 1 }
 0x100   :  { %v327_v58 = vadd.f32 %v326_v56, %v325_v50 }
 0x102   :  { %v330_v59 = vadd.f32 %v329_v57, %v327_v58 }
 0x104   :  { %v332_v60 = vmul.f32 1.442695, %v330_v59  ;;  %vm331_vm10 = vcmp.gt.f32.partialorder %v330_v59, 0.0 }
 0x106   :  { %418 = vpow2.f32 %v332_v60 }
 0x113   :  { %v419_v61 = vpop.eup %418 }
 0x114   :  { %v358_v62 = vadd.f32 -1.0, %v419_v61 }
 0x116   :  { %v335_v63 = vsel %vm331_vm10, %v330_v59, %v358_v62 }
 0x117   :  { %337 = vst.msk [vmem:[%s572_s5] sm:$0x1] %vm336_vm9, %v335_v63 }

</bundles_post_ra>
